<compile_context>
chip_gen: v7x
topology: tpu7x:2x2x1
jax: 0.10.0
libtpu: 0.0.40
codegen_flags: <defaults>
</compile_context>

<pallas_src>
import jax
import jax.numpy as jnp
import numpy as np
from jax import lax
from jax.experimental import pallas as pl
from jax.experimental.pallas import tpu as pltpu


def _make_dwconv_kernel(C, H, R, WC, mode):
    """Kernel factory.

    mode == "mask": R % H == 0 (tiles hold whole images); image-top/bottom
        rows are zeroed with two (R,1) row masks.
    mode == "halo": H % R == 0 (tiles subdivide images); the +/-1 row needed at
        tile edges comes from a (2, WC) halo side input (pre-zeroed by the
        wrapper where the tile edge is also an image edge).
    """

    def compute(x, halo, w, b):
        # x: (R, WC) f32, halo: (2, WC) f32 or None, w: (3, 3, WC) f32,
        # b: (1, WC) f32.  Lane wrap-around garbage from the W rolls is killed
        # by the edge-zeroed taps baked into w in the wrapper.
        xl = pltpu.roll(x, C, axis=1)               # value at W-position x-1
        xr = pltpu.roll(x, (WC - C) % WC, axis=1)   # value at W-position x+1

        # Per-input-row partial sums (kernel rows 0/1/2), lane-dense FMAs only.
        s0 = xl * w[0, 0] + x * w[0, 1] + xr * w[0, 2]
        s1 = xl * w[1, 0] + x * w[1, 1] + xr * w[1, 2]
        s2 = xl * w[2, 0] + x * w[2, 1] + xr * w[2, 2]

        top = pltpu.roll(s0, 1, axis=0)             # top[r] = s0[r-1] (r=0 wraps)
        bot = pltpu.roll(s2, R - 1, axis=0)         # bot[r] = s2[r+1] (r=R-1 wraps)

        row = lax.broadcasted_iota(jnp.int32, (R, 1), 0)
        if mode == "mask":
            rh = row % H
            top = jnp.where(rh != 0, top, 0.0)
            bot = jnp.where(rh != H - 1, bot, 0.0)
        else:
            hl = pltpu.roll(halo, C, axis=1)
            hr = pltpu.roll(halo, (WC - C) % WC, axis=1)
            s0_up = (hl * w[0, 0] + halo * w[0, 1] + hr * w[0, 2])[0:1]
            s2_dn = (hl * w[2, 0] + halo * w[2, 1] + hr * w[2, 2])[1:2]
            top = jnp.where(row == 0, s0_up, top)
            bot = jnp.where(row == R - 1, s2_dn, bot)

        return b + top + s1 + bot                   # bias folded into the sum

    if mode == "halo":
        def kernel(x_ref, halo_ref, w_ref, b_ref, o_ref):
            o_ref[...] = compute(
                x_ref[...].astype(jnp.float32),
                halo_ref[0].astype(jnp.float32),
                w_ref[...].astype(jnp.float32),
                b_ref[...].astype(jnp.float32),
            ).astype(o_ref.dtype)
    else:
        def kernel(x_ref, w_ref, b_ref, o_ref):
            o_ref[...] = compute(
                x_ref[...].astype(jnp.float32),
                None,
                w_ref[...].astype(jnp.float32),
                b_ref[...].astype(jnp.float32),
            ).astype(o_ref.dtype)

    return kernel


def _choose_tiling(B, H, WC, max_block_bytes=1 << 20):
    """Pick rows-per-block R and halo mode.  Budget counted in f32 bytes since
    in-kernel temporaries are f32 regardless of the I/O dtype; ~1 MiB blocks
    keep (block + ~6 f32 temporaries + double-buffered in/out) well under the
    16/32 MiB default scoped VMEM on v5e/v6e/v7x."""
    BH = B * H
    row_bytes = WC * 4
    img_bytes = H * row_bytes
    if img_bytes <= max_block_bytes:
        # Tiles of k whole images (no halo plumbing); block rows must be a
        # multiple of 8 (layout constraint) or equal the full row extent.
        for k in range(B, 0, -1):
            if (B % k == 0 and k * img_bytes <= max_block_bytes
                    and ((k * H) % 8 == 0 or k * H == BH)):
                return k * H, "mask"
    # One image too big (or no legal k): sub-image row tiles with halo rows.
    for r in range(H, 0, -1):
        if H % r == 0 and r % 8 == 0 and r * row_bytes <= max_block_bytes:
            return r, "halo"
    # Fallback: single block covering everything (always layout-legal).
    return BH, "mask"


def dwconv_pallas(x, weight, bias, H, W, *, rows_per_block=None, mode=None,
                  max_block_bytes=1 << 20):
    """x: (B, N, C) with N == H*W; weight: (3, 3, C); bias: (C,) -> (B, N, C)."""
    B, N, C = x.shape
    assert N == H * W
    WC = W * C
    BH = B * H

    if rows_per_block is None or mode is None:
        rows_per_block, mode = _choose_tiling(B, H, WC, max_block_bytes)
    R = rows_per_block
    assert BH % R == 0
    assert (R % H == 0) if mode == "mask" else (H % R == 0)
    num_tiles = BH // R

    # (B, N, C) -> (B*H, W*C): contiguous reshape, no transpose / no HBM copy.
    x_flat = x.reshape(BH, WC)

    # Pre-tile taps along W and bake the W-edge masks into them: the j=-1 taps
    # never see W-position 0 (first C lanes), the j=+1 taps never see
    # W-position W-1 (last C lanes).  Each of the 9 taps keeps its own masked
    # (WC,) vector.
    w_tiled = jnp.tile(weight, (1, 1, W)).astype(jnp.float32)     # (3, 3, WC)
    lane = jnp.arange(WC)
    w_tiled = w_tiled.at[:, 0, :].multiply((lane >= C).astype(jnp.float32))
    w_tiled = w_tiled.at[:, 2, :].multiply((lane < WC - C).astype(jnp.float32))
    b_tiled = jnp.tile(bias, W).reshape(1, WC).astype(jnp.float32)

    in_arrays = [x_flat]
    in_specs = [pl.BlockSpec((R, WC), lambda t: (t, 0))]

    if mode == "halo":
        # Per-tile halo rows: row 0 = neighbor above the tile's first row,
        # row 1 = neighbor below the tile's last row; zeroed when that edge is
        # also an image edge.  Only 2 extra rows of HBM traffic per tile.
        t_idx = jnp.arange(num_tiles)
        up_idx = jnp.clip(t_idx * R - 1, 0, BH - 1)
        dn_idx = jnp.clip((t_idx + 1) * R, 0, BH - 1)
        up_ok = ((t_idx * R) % H != 0)[:, None]
        dn_ok = (((t_idx + 1) * R) % H != 0)[:, None]
        zero = jnp.zeros((), x.dtype)
        halo = jnp.stack([jnp.where(up_ok, x_flat[up_idx], zero),
                          jnp.where(dn_ok, x_flat[dn_idx], zero)],
                         axis=1)                                   # (T, 2, WC)
        in_arrays.append(halo)
        in_specs.append(pl.BlockSpec((1, 2, WC), lambda t: (t, 0, 0)))

    in_arrays += [w_tiled, b_tiled]
    in_specs += [pl.BlockSpec((3, 3, WC), lambda t: (0, 0, 0)),
                 pl.BlockSpec((1, WC), lambda t: (0, 0))]

    out = pl.pallas_call(
        _make_dwconv_kernel(C, H, R, WC, mode),
        out_shape=jax.ShapeDtypeStruct((BH, WC), x.dtype),
        grid=(num_tiles,),
        in_specs=in_specs,
        out_specs=pl.BlockSpec((R, WC), lambda t: (t, 0)),
        compiler_params=pltpu.CompilerParams(
            dimension_semantics=("parallel",)),
    )(*in_arrays)

    return out.reshape(B, N, C)


def dwconv_reference(x, weight, bias, H, W):
    """Pure-JAX reference using lax.conv (depthwise via feature_group_count)."""
    B, N, C = x.shape
    x_nchw = jnp.transpose(x, (0, 2, 1)).reshape(B, C, H, W)
    w_oihw = jnp.transpose(weight, (2, 0, 1))[:, None, :, :]       # (C, 1, 3, 3)
    y = lax.conv_general_dilated(
        x_nchw, w_oihw, window_strides=(1, 1), padding=((1, 1), (1, 1)),
        dimension_numbers=("NCHW", "OIHW", "NCHW"), feature_group_count=C)
    y = y + bias[None, :, None, None]
    return jnp.transpose(y.reshape(B, C, H * W), (0, 2, 1))


if __name__ == "__main__":
    key = jax.random.PRNGKey(0)
    B, C, H, W = 2, 8, 16, 16          # W*C = 128 -> one full lane row
    N = H * W

    kx, kw, kb = jax.random.split(key, 3)
    x = jax.random.normal(kx, (B, N, C), dtype=jnp.float32)
    # Conv2d(dim, dim, 3, groups=dim) weight (dim, 1, 3, 3) + bias (dim,)
    # stored here as (3, 3, C) + (C,).
    weight = jax.random.normal(kw, (3, 3, C), dtype=jnp.float32) * 0.1
    bias = jax.random.normal(kb, (C,), dtype=jnp.float32) * 0.1

    ref = jax.block_until_ready(dwconv_reference(x, weight, bias, H, W))

    # 1) Auto-tiling path (whole-image tiles, "mask" mode, single big block).
    out = jax.block_until_ready(dwconv_pallas(x, weight, bias, H, W))
    np.testing.assert_allclose(np.asarray(out), np.asarray(ref),
                               rtol=1e-5, atol=1e-5)

    # 2) Forced sub-image row tiling with halo rows ("halo" mode, the path
    #    large v7x-sized feature maps take).
    out_halo = jax.block_until_ready(
        dwconv_pallas(x, weight, bias, H, W, rows_per_block=8, mode="halo"))
    np.testing.assert_allclose(np.asarray(out_halo), np.asarray(ref),
                               rtol=1e-5, atol=1e-5)

    # 3) bf16 I/O (halves HBM traffic); compute stays f32 in-kernel.
    xb = x.astype(jnp.bfloat16)
    out_bf = jax.block_until_ready(dwconv_pallas(xb, weight, bias, H, W))
    ref_bf = dwconv_reference(xb.astype(jnp.float32), weight, bias, H, W)
    np.testing.assert_allclose(np.asarray(out_bf).astype(np.float32),
                               np.asarray(ref_bf), rtol=2e-2, atol=2e-2)

    print("KERNEL_OK")
</pallas_src>

<mosaic_0001>
module attributes {stable_mosaic.version = 11 : i64} {
  func.func @kernel(%arg0: i32, %arg1: memref<32x128xf32, #tpu.memory_space<vmem>>, %arg2: memref<3x3x128xf32, #tpu.memory_space<vmem>>, %arg3: memref<1x128xf32, #tpu.memory_space<vmem>>, %arg4: memref<32x128xf32, #tpu.memory_space<vmem>>) attributes {dimension_semantics = [#tpu.dimension_semantics<parallel>], iteration_bounds = array<i64: 1>, scalar_prefetch = 0 : i64, scratch_operands = 0 : i64, tpu.core_type = #tpu.core_type<tc>, window_params = [{transform_indices = @transform_0, window_bounds = array<i64: 32, 128>}, {pipeline_mode = #tpu.pipeline_mode<synchronous>, transform_indices = @transform_1, window_bounds = array<i64: 3, 3, 128>}, {pipeline_mode = #tpu.pipeline_mode<synchronous>, transform_indices = @transform_2, window_bounds = array<i64: 1, 128>}, {transform_indices = @transform_3, window_bounds = array<i64: 32, 128>}]} {
    %c0 = arith.constant 0 : index
    %c0_0 = arith.constant 0 : index
    %0 = vector.load %arg1[%c0, %c0_0] : memref<32x128xf32, #tpu.memory_space<vmem>>, vector<32x128xf32>
    %c0_1 = arith.constant 0 : index
    %c0_2 = arith.constant 0 : index
    %c0_3 = arith.constant 0 : index
    %1 = vector.load %arg2[%c0_1, %c0_2, %c0_3] : memref<3x3x128xf32, #tpu.memory_space<vmem>>, vector<3x3x128xf32>
    %c0_4 = arith.constant 0 : index
    %c0_5 = arith.constant 0 : index
    %2 = vector.load %arg3[%c0_4, %c0_5] : memref<1x128xf32, #tpu.memory_space<vmem>>, vector<1x128xf32>
    %c8_i32 = arith.constant 8 : i32
    %3 = tpu.dynamic_rotate %0 by %c8_i32 dim 1 : vector<32x128xf32>, i32 -> vector<32x128xf32>
    %c120_i32 = arith.constant 120 : i32
    %4 = tpu.dynamic_rotate %0 by %c120_i32 dim 1 : vector<32x128xf32>, i32 -> vector<32x128xf32>
    %5 = vector.extract_strided_slice %1 {offsets = [0, 0, 0], sizes = [1, 1, 128], strides = [1, 1, 1]} : vector<3x3x128xf32> to vector<1x1x128xf32>
    %6 = vector.shape_cast %5 : vector<1x1x128xf32> to vector<128xf32>
    %7 = vector.shape_cast %6 : vector<128xf32> to vector<1x128xf32>
    %8 = vector.broadcast %7 : vector<1x128xf32> to vector<32x128xf32>
    %9 = arith.mulf %3, %8 : vector<32x128xf32>
    %10 = vector.extract_strided_slice %1 {offsets = [0, 1, 0], sizes = [1, 1, 128], strides = [1, 1, 1]} : vector<3x3x128xf32> to vector<1x1x128xf32>
    %11 = vector.shape_cast %10 : vector<1x1x128xf32> to vector<128xf32>
    %12 = vector.shape_cast %11 : vector<128xf32> to vector<1x128xf32>
    %13 = vector.broadcast %12 : vector<1x128xf32> to vector<32x128xf32>
    %14 = arith.mulf %0, %13 : vector<32x128xf32>
    %15 = arith.addf %9, %14 : vector<32x128xf32>
    %16 = vector.extract_strided_slice %1 {offsets = [0, 2, 0], sizes = [1, 1, 128], strides = [1, 1, 1]} : vector<3x3x128xf32> to vector<1x1x128xf32>
    %17 = vector.shape_cast %16 : vector<1x1x128xf32> to vector<128xf32>
    %18 = vector.shape_cast %17 : vector<128xf32> to vector<1x128xf32>
    %19 = vector.broadcast %18 : vector<1x128xf32> to vector<32x128xf32>
    %20 = arith.mulf %4, %19 : vector<32x128xf32>
    %21 = arith.addf %15, %20 : vector<32x128xf32>
    %22 = vector.extract_strided_slice %1 {offsets = [1, 0, 0], sizes = [1, 1, 128], strides = [1, 1, 1]} : vector<3x3x128xf32> to vector<1x1x128xf32>
    %23 = vector.shape_cast %22 : vector<1x1x128xf32> to vector<128xf32>
    %24 = vector.shape_cast %23 : vector<128xf32> to vector<1x128xf32>
    %25 = vector.broadcast %24 : vector<1x128xf32> to vector<32x128xf32>
    %26 = arith.mulf %3, %25 : vector<32x128xf32>
    %27 = vector.extract_strided_slice %1 {offsets = [1, 1, 0], sizes = [1, 1, 128], strides = [1, 1, 1]} : vector<3x3x128xf32> to vector<1x1x128xf32>
    %28 = vector.shape_cast %27 : vector<1x1x128xf32> to vector<128xf32>
    %29 = vector.shape_cast %28 : vector<128xf32> to vector<1x128xf32>
    %30 = vector.broadcast %29 : vector<1x128xf32> to vector<32x128xf32>
    %31 = arith.mulf %0, %30 : vector<32x128xf32>
    %32 = arith.addf %26, %31 : vector<32x128xf32>
    %33 = vector.extract_strided_slice %1 {offsets = [1, 2, 0], sizes = [1, 1, 128], strides = [1, 1, 1]} : vector<3x3x128xf32> to vector<1x1x128xf32>
    %34 = vector.shape_cast %33 : vector<1x1x128xf32> to vector<128xf32>
    %35 = vector.shape_cast %34 : vector<128xf32> to vector<1x128xf32>
    %36 = vector.broadcast %35 : vector<1x128xf32> to vector<32x128xf32>
    %37 = arith.mulf %4, %36 : vector<32x128xf32>
    %38 = arith.addf %32, %37 : vector<32x128xf32>
    %39 = vector.extract_strided_slice %1 {offsets = [2, 0, 0], sizes = [1, 1, 128], strides = [1, 1, 1]} : vector<3x3x128xf32> to vector<1x1x128xf32>
    %40 = vector.shape_cast %39 : vector<1x1x128xf32> to vector<128xf32>
    %41 = vector.shape_cast %40 : vector<128xf32> to vector<1x128xf32>
    %42 = vector.broadcast %41 : vector<1x128xf32> to vector<32x128xf32>
    %43 = arith.mulf %3, %42 : vector<32x128xf32>
    %44 = vector.extract_strided_slice %1 {offsets = [2, 1, 0], sizes = [1, 1, 128], strides = [1, 1, 1]} : vector<3x3x128xf32> to vector<1x1x128xf32>
    %45 = vector.shape_cast %44 : vector<1x1x128xf32> to vector<128xf32>
    %46 = vector.shape_cast %45 : vector<128xf32> to vector<1x128xf32>
    %47 = vector.broadcast %46 : vector<1x128xf32> to vector<32x128xf32>
    %48 = arith.mulf %0, %47 : vector<32x128xf32>
    %49 = arith.addf %43, %48 : vector<32x128xf32>
    %50 = vector.extract_strided_slice %1 {offsets = [2, 2, 0], sizes = [1, 1, 128], strides = [1, 1, 1]} : vector<3x3x128xf32> to vector<1x1x128xf32>
    %51 = vector.shape_cast %50 : vector<1x1x128xf32> to vector<128xf32>
    %52 = vector.shape_cast %51 : vector<128xf32> to vector<1x128xf32>
    %53 = vector.broadcast %52 : vector<1x128xf32> to vector<32x128xf32>
    %54 = arith.mulf %4, %53 : vector<32x128xf32>
    %55 = arith.addf %49, %54 : vector<32x128xf32>
    %c1_i32 = arith.constant 1 : i32
    %56 = tpu.dynamic_rotate %21 by %c1_i32 dim 0 : vector<32x128xf32>, i32 -> vector<32x128xf32>
    %c31_i32 = arith.constant 31 : i32
    %57 = tpu.dynamic_rotate %55 by %c31_i32 dim 0 : vector<32x128xf32>, i32 -> vector<32x128xf32>
    %58 = tpu.iota {dimensions = array<i32: 0>} : vector<32x1xi32>
    %c16_i32 = arith.constant 16 : i32
    %c0_i32 = arith.constant 0 : i32
    %59 = arith.cmpi eq, %c16_i32, %c0_i32 : i32
    %c1_i32_6 = arith.constant 1 : i32
    %60 = arith.select %59, %c1_i32_6, %c16_i32 : i32
    %61 = vector.broadcast %60 : i32 to vector<32x1xi32>
    %62 = arith.remsi %58, %61 : vector<32x1xi32>
    %c0_i32_7 = arith.constant 0 : i32
    %63 = vector.broadcast %c0_i32_7 : i32 to vector<32x1xi32>
    %64 = arith.cmpi ne, %62, %63 : vector<32x1xi32>
    %c0_i32_8 = arith.constant 0 : i32
    %65 = vector.broadcast %c0_i32_8 : i32 to vector<32x1xi32>
    %66 = arith.cmpi slt, %62, %65 : vector<32x1xi32>
    %c0_i32_9 = arith.constant 0 : i32
    %67 = arith.cmpi slt, %60, %c0_i32_9 : i32
    %68 = vector.broadcast %67 : i1 to vector<32x1xi1>
    %69 = vector.broadcast %68 : vector<32x1xi1> to vector<32x1xi1>
    %70 = arith.xori %66, %69 : vector<32x1xi1>
    %71 = arith.andi %70, %64 : vector<32x1xi1>
    %72 = vector.broadcast %60 : i32 to vector<32x1xi32>
    %73 = arith.addi %62, %72 : vector<32x1xi32>
    %74 = arith.select %71, %73, %62 : vector<32x1xi1>, vector<32x1xi32>
    %c0_i32_10 = arith.constant 0 : i32
    %75 = vector.broadcast %c0_i32_10 : i32 to vector<32x1xi32>
    %76 = arith.cmpi ne, %74, %75 : vector<32x1xi32>
    %cst = arith.constant 0.000000e+00 : f32
    %77 = vector.shape_cast %76 : vector<32x1xi1> to vector<32x1xi1>
    %78 = vector.broadcast %77 : vector<32x1xi1> to vector<32x128xi1>
    %79 = vector.broadcast %cst : f32 to vector<32x128xf32>
    %80 = arith.select %78, %56, %79 : vector<32x128xi1>, vector<32x128xf32>
    %c15_i32 = arith.constant 15 : i32
    %81 = vector.broadcast %c15_i32 : i32 to vector<32x1xi32>
    %82 = arith.cmpi ne, %74, %81 : vector<32x1xi32>
    %cst_11 = arith.constant 0.000000e+00 : f32
    %83 = vector.shape_cast %82 : vector<32x1xi1> to vector<32x1xi1>
    %84 = vector.broadcast %83 : vector<32x1xi1> to vector<32x128xi1>
    %85 = vector.broadcast %cst_11 : f32 to vector<32x128xf32>
    %86 = arith.select %84, %57, %85 : vector<32x128xi1>, vector<32x128xf32>
    %87 = vector.broadcast %2 : vector<1x128xf32> to vector<32x128xf32>
    %88 = arith.addf %87, %80 : vector<32x128xf32>
    %89 = arith.addf %88, %38 : vector<32x128xf32>
    %90 = arith.addf %89, %86 : vector<32x128xf32>
    %c0_12 = arith.constant 0 : index
    %c0_13 = arith.constant 0 : index
    %91 = vector.load %arg4[%c0_12, %c0_13] : memref<32x128xf32, #tpu.memory_space<vmem>>, vector<32x128xf32>
    tpu.vector_store %arg4[%c0_12, %c0_13], %90 {strides = array<i32>} : memref<32x128xf32, #tpu.memory_space<vmem>>, vector<32x128xf32>,
    return
  }
  func.func @transform_0(%arg0: i32) -> (i32, i32) {
    %c0_i32 = arith.constant 0 : i32
    %c0_i32_0 = arith.constant 0 : i32
    return %arg0, %c0_i32 : i32, i32
  }
  func.func @transform_1(%arg0: i32) -> (i32, i32, i32) {
    %c0_i32 = arith.constant 0 : i32
    %c0_i32_0 = arith.constant 0 : i32
    %c0_i32_1 = arith.constant 0 : i32
    %c0_i32_2 = arith.constant 0 : i32
    return %c0_i32, %c0_i32_0, %c0_i32_1 : i32, i32, i32
  }
  func.func @transform_2(%arg0: i32) -> (i32, i32) {
    %c0_i32 = arith.constant 0 : i32
    %c0_i32_0 = arith.constant 0 : i32
    %c0_i32_1 = arith.constant 0 : i32
    return %c0_i32, %c0_i32_0 : i32, i32
  }
  func.func @transform_3(%arg0: i32) -> (i32, i32) {
    %c0_i32 = arith.constant 0 : i32
    %c0_i32_0 = arith.constant 0 : i32
    return %arg0, %c0_i32 : i32, i32
  }
}

</mosaic_0001>

<bundles_post_ra>
// kernel: tpu_custom_call.1
= control target key start
LH: loop header
LB: loop body
LE: loop exit
PB: predicated region body
PF: predicated region fallthrough
CT: control target
= control target key end

     0   :  { %8 = vsyncpa [#allocation3], 0  ;;  %s539_s0 = inlined_call_operand.hbm [shape: f32[32,128], index: 0, kind: input, shape index: {}]   ;;  %s540_s1 = inlined_call_operand.hbm [shape: f32[3,3,128], index: 1, kind: input, shape index: {}]   ;;  %s541_s2 = inlined_call_operand.vmem [shape: f32[1,128], index: 2, kind: input, shape index: {}]   ;;  %s542_s3 = inlined_call_operand.hbm [shape: f32[32,128], index: 3, kind: output, shape index: {}]  }
   0x1   :  { %9 = vsyncpa [#allocation6], 0 }
   0x2   :  { %10 = vsyncpa [#allocation4], 0  ;;  %s387_s12 = smov [#allocation2]   ;;  %s315_s16 = scalar_lea.hbm %s539_s0, 512 }
   0x3   :  { %s16_s13 = sshll.u32 %s387_s12, 4  ;;  %p316_p0 = scmp.ne.s32.totalorder %s539_s0, %s315_s16  ;;  %s17_s13 = int_to_ptr.vmem [resolvable:$true] %s16_s13 }
   0x4   :  { %p319_p1 = scmp.lt.u32.totalorder %s315_s16, %s539_s0 }
   0x6   :  { %p321_p2 = pnand %p319_p1, %p316_p0 }
   0x8   :  { %324 = shalt.err (!%p321_p2)
}
   0x9   :  { %s325_s21 = scalar_lea.vmem %s17_s13, 512  ;;  %p330_p4 = scmp.lt.s32.totalorder %s17_s13, %s17_s13 }
   0xa   :  { %p326_p3 = scmp.ne.s32.totalorder %s17_s13, %s325_s21  ;;  %p331_p5 = scmp.lt.s32.totalorder %s325_s21, %s325_s21 }
   0xc   :  { %p332_p6 = por %p331_p5, %p330_p4 }
   0xe   :  { %p333_p7 = pnand %p332_p6, %p326_p3 }
  0x10   :  { %336 = shalt.err (!%p333_p7)
}
  0x11   :  { %s388_s22 = smov 128   ;;  %s389_s23 = smov 8  }
  0x12   :  { %22 = dma.hbm_to_vmem [thread:$0]  %s539_s0, 512, %s17_s13, [#allocation3], %s388_s22, %s388_s22, %s389_s23  }
  0x13   :  { %s390_s26 = smov [#allocation5]   ;;  %s337_s30 = scalar_lea.hbm %s540_s1, 192 }
  0x14   :  { %s28_s27 = sshll.u32 %s390_s26, 4  ;;  %p338_p8 = scmp.ne.s32.totalorder %s540_s1, %s337_s30  ;;  %s29_s27 = int_to_ptr.vmem [resolvable:$true] %s28_s27 }
  0x15   :  { %p341_p9 = scmp.lt.u32.totalorder %s337_s30, %s540_s1 }
  0x17   :  { %p343_p10 = pnand %p341_p9, %p338_p8 }
  0x19   :  { %346 = shalt.err (!%p343_p10)
}
  0x1a   :  { %s347_s8 = scalar_lea.vmem %s29_s27, 192  ;;  %p352_p12 = scmp.lt.s32.totalorder %s29_s27, %s29_s27 }
  0x1b   :  { %p348_p11 = scmp.ne.s32.totalorder %s29_s27, %s347_s8  ;;  %p353_p13 = scmp.lt.s32.totalorder %s347_s8, %s347_s8 }
  0x1d   :  { %p354_p0 = por %p353_p13, %p352_p12 }
  0x1f   :  { %p355_p1 = pnand %p354_p0, %p348_p11 }
  0x21   :  { %358 = shalt.err (!%p355_p1)
}
  0x22   :  { %s391_s0 = smov 64   ;;  %s392_s9 = smov 4  }
  0x23   :  { %34 = dma.hbm_to_vmem [thread:$0]  %s540_s1, 192, %s29_s27, [#allocation6], %s391_s0, %s391_s0, %s392_s9  }
  0x24   :  { %381 = dma.done.wait [#allocation3], 512  }
  0x25   :  { %382 = vsyncadd [#allocation3], 4294966784 }
  0x26   :  { %383 = dma.done.wait [#allocation6], 192  }
  0x27   :  { %384 = vsyncadd [#allocation6], 4294967104  ;;  %v45_v0 = vld [vmem:[#allocation2 + $0x10] sm:$0xff]  ;;  %v43_v1 = vld [vmem:[#allocation2] sm:$0xff]  ;;  %s393_s12 = smov 120   ;;  %v67_v4 = vlaneseq }
  0x28   :  { %55 = vrot.lane.b32.xlu1 %v45_v0, %s389_s23  ;;  %51 = vrot.lane.b32.xlu0 %v43_v1, %s389_s23  ;;  %v46_v2 = vld [vmem:[#allocation2 + $0x18] sm:$0xff]  ;;  %v44_v3 = vld [vmem:[#allocation2 + $0x8] sm:$0xff]  ;;  %v47_v7 = vld [vmem:[#allocation5] sm:$0x7] }
  0x29   :  { %v446_v5 = vshrl.u32 %v67_v4, 7  ;;  %v48_v8 = vld [vmem:[#allocation5 + $0x4] sm:$0x7]  ;;  %v49_v9 = vld [vmem:[#allocation5 + $0x8] sm:$0x7] }
  0x2b   :  { %v77_v6 = vsub.s32 1, %v446_v5  ;;  %v69_v10 = vsub.s32 0, %v446_v5  ;;  %v89_v12 = vsub.s32 2, %v446_v5  ;;  %v460_v26 = vadd.s32 24, %v446_v5 }
  0x2c   :  { %57 = vrot.lane.b32.xlu1 %v46_v2, %s389_s23  ;;  %53 = vrot.lane.b32.xlu0 %v44_v3, %s389_s23  ;;  %v183_v30 = vadd.s32 8, %v446_v5  ;;  %v184_v34 = vadd.s32 16, %v446_v5  ;;  %vm169_vm0 = vcmp.lt.s32.totalorder %v446_v5, 1  ;;  %vm178_vm1 = vcmp.lt.s32.totalorder %v446_v5, 7 }
  0x2d   :  { %v78_v11 = vrot.slane %v47_v7, %v77_v6  ;;  %v110_v13 = vrot.slane %v48_v8, %v77_v6  ;;  %v142_v14 = vrot.slane %v49_v9, %v77_v6  ;;  %v70_v15 = vrot.slane %v47_v7, %v69_v10 }
  0x2e   :  { %v102_v16 = vrot.slane %v48_v8, %v69_v10  ;;  %v134_v17 = vrot.slane %v49_v9, %v69_v10  ;;  %v451_v21 = vrot.slane %v47_v7, %v89_v12  ;;  %v453_v22 = vrot.slane %v48_v8, %v89_v12 }
  0x2f   :  { %v81_v19 = vmul.f32 %v78_v11, %v45_v0  ;;  %v455_v23 = vmul.f32 %v110_v13, %v45_v0  ;;  %v79_v24 = vmul.f32 %v78_v11, %v43_v1  ;;  %v457_v25 = vmul.f32 %v110_v13, %v43_v1 }
  0x30   :  { %61 = vrot.lane.b32.xlu1 %v44_v3, %s393_s12  ;;  %59 = vrot.lane.b32.xlu0 %v43_v1, %s393_s12  ;;  %v145_v27 = vmul.f32 %v142_v14, %v45_v0  ;;  %v143_v28 = vmul.f32 %v142_v14, %v43_v1  ;;  %v82_v29 = vmul.f32 %v78_v11, %v46_v2  ;;  %v190_v43 = vand.u32 15, %v446_v5 }
  0x31   :  { %v463_v32 = vmul.f32 %v110_v13, %v46_v2  ;;  %v146_v33 = vmul.f32 %v142_v14, %v46_v2  ;;  %v80_v37 = vmul.f32 %v78_v11, %v44_v3  ;;  %v112_v38 = vmul.f32 %v110_v13, %v44_v3 }
  0x32   :  { %v144_v39 = vmul.f32 %v142_v14, %v44_v3  ;;  %v154_v42 = vrot.slane %v49_v9, %v89_v12  ;;  %v211_v44 = vand.u32 15, %v460_v26  ;;  %v197_v48 = vand.u32 15, %v183_v30 }
  0x33   :  { %v204_v52 = vand.u32 15, %v184_v34  ;;  %vm472_vm2 = vcmp.ne.s32.totalorder %v190_v43, 0 }
  0x34   :  { %65 = vrot.lane.b32.xlu1 %v46_v2, %s393_s12  ;;  %63 = vrot.lane.b32.xlu0 %v45_v0, %s393_s12  ;;  %vm481_vm4 = vcmp.ne.s32.totalorder %v197_v48, 15  ;;  %vm489_vm5 = vcmp.ne.s32.totalorder %v211_v44, 15 }
  0x35   :  { %vm476_vm3 = vcmp.ne.s32.totalorder %v204_v52, 0 }
  0x9a   :  { %v56_v18 = vpop.permute.xlu1 %55  ;;  %v52_v20 = vpop.permute.xlu0 %51 }
  0x9b   :  { %v73_v31 = vmul.f32 %v70_v15, %v56_v18  ;;  %v71_v35 = vmul.f32 %v70_v15, %v52_v20  ;;  %v137_v45 = vmul.f32 %v134_v17, %v56_v18  ;;  %v135_v46 = vmul.f32 %v134_v17, %v52_v20 }
  0x9c   :  { %v105_v50 = vmul.f32 %v102_v16, %v56_v18  ;;  %v103_v51 = vmul.f32 %v102_v16, %v52_v20 }
  0x9d   :  { %v85_v49 = vadd.f32 %v81_v19, %v73_v31  ;;  %v83_v53 = vadd.f32 %v79_v24, %v71_v35  ;;  %v149_v0 = vadd.f32 %v145_v27, %v137_v45  ;;  %v147_v1 = vadd.f32 %v143_v28, %v135_v46  ;;  %v306_v19 = vld [vmem:[%s541_s2] ss:$0 sm:$0xff]  ;;  %s394_s2 = smov [#allocation7]  }
  0x9e   :  { %v58_v36 = vpop.permute.xlu1 %57  ;;  %v54_v40 = vpop.permute.xlu0 %53  ;;  %s293_s14 = sshll.u32 %s394_s2, 4  ;;  %s294_s14 = int_to_ptr.vmem [resolvable:$true] %s293_s14 }
  0x9f   :  { %v72_v41 = vmul.f32 %v70_v15, %v54_v40  ;;  %v136_v47 = vmul.f32 %v134_v17, %v54_v40  ;;  %v74_v54 = vmul.f32 %v70_v15, %v58_v36  ;;  %v138_v55 = vmul.f32 %v134_v17, %v58_v36  ;;  %s359_s15 = scalar_lea.vmem %s294_s14, 512  ;;  %p364_p3 = scmp.lt.s32.totalorder %s294_s14, %s294_s14 }
  0xa0   :  { %v104_v2 = vmul.f32 %v102_v16, %v54_v40  ;;  %v106_v4 = vmul.f32 %v102_v16, %v58_v36  ;;  %p360_p2 = scmp.ne.s32.totalorder %s294_s14, %s359_s15  ;;  %p365_p4 = scmp.lt.s32.totalorder %s359_s15, %s359_s15 }
  0xa1   :  { %v84_v56 = vadd.f32 %v80_v37, %v72_v41  ;;  %v148_v59 = vadd.f32 %v144_v39, %v136_v47  ;;  %v86_v10 = vadd.f32 %v82_v29, %v74_v54  ;;  %v150_v11 = vadd.f32 %v146_v33, %v138_v55 }
  0xa2   :  { %v62_v57 = vpop.permute.xlu1 %61  ;;  %v60_v58 = vpop.permute.xlu0 %59  ;;  %v116_v26 = vadd.f32 %v112_v38, %v104_v2  ;;  %v118_v45 = vadd.f32 %v463_v32, %v106_v4  ;;  %v117_v54 = vadd.f32 %v455_v23, %v105_v50  ;;  %p366_p5 = por %p365_p4, %p364_p3 }
  0xa3   :  { %v92_v60 = vmul.f32 %v451_v21, %v62_v57  ;;  %v156_v61 = vmul.f32 %v154_v42, %v62_v57  ;;  %v91_v62 = vmul.f32 %v451_v21, %v60_v58  ;;  %v155_v3 = vmul.f32 %v154_v42, %v60_v58 }
  0xa4   :  { %v124_v12 = vmul.f32 %v453_v22, %v62_v57  ;;  %v123_v31 = vmul.f32 %v453_v22, %v60_v58  ;;  %p367_p6 = pnand %p366_p5, %p360_p2 }
  0xa5   :  { %v96_v6 = vadd.f32 %v92_v60, %v84_v56  ;;  %v160_v7 = vadd.f32 %v156_v61, %v148_v59  ;;  %v95_v8 = vadd.f32 %v91_v62, %v83_v53  ;;  %v159_v13 = vadd.f32 %v155_v3, %v147_v1 }
  0xa6   :  { %v66_v14 = vpop.permute.xlu1 %65  ;;  %v64_v17 = vpop.permute.xlu0 %63  ;;  %v128_v36 = vadd.f32 %v124_v12, %v116_v26 }
  0xa7   :  { %v164_v18 = vrot.slane %v96_v6, 7  ;;  %v175_v16 = vrot.slane %v160_v7, 1  ;;  %v163_v20 = vrot.slane %v95_v8, 7  ;;  %v94_v24 = vmul.f32 %v451_v21, %v66_v14 }
  0xa8   :  { %v174_v27 = vrot.slane %v159_v13, 1  ;;  %v158_v29 = vmul.f32 %v154_v42, %v66_v14  ;;  %v93_v30 = vmul.f32 %v451_v21, %v64_v17  ;;  %v157_v35 = vmul.f32 %v154_v42, %v64_v17 }
  0xa9   :  { %v172_v33 = vsel %vm169_vm0, %v163_v20, %v164_v18  ;;  %v98_v34 = vadd.f32 %v94_v24, %v86_v10  ;;  %v126_v40 = vmul.f32 %v453_v22, %v66_v14  ;;  %v115_v21 = vadd.f32 %v457_v25, %v103_v51 }
  0xaa   :  { %v181_v37 = vsel %vm178_vm1, %v174_v27, %v175_v16  ;;  %v273_v38 = vadd.f32 %v306_v19, %v172_v33  ;;  %v162_v39 = vadd.f32 %v158_v29, %v150_v11  ;;  %v97_v43 = vadd.f32 %v93_v30, %v85_v49 }
  0xab   :  { %v166_v41 = vrot.slane %v98_v34, 7  ;;  %v161_v44 = vadd.f32 %v157_v35, %v149_v0  ;;  %v125_v48 = vmul.f32 %v453_v22, %v64_v17  ;;  %v127_v55 = vadd.f32 %v123_v31, %v115_v21 }
  0xac   :  { %v177_v46 = vrot.slane %v162_v39, 1  ;;  %v277_v47 = vadd.f32 %v273_v38, %v128_v36  ;;  %v165_v52 = vrot.slane %v97_v43, 7  ;;  %v130_v51 = vadd.f32 %v126_v40, %v118_v45 }
  0xad   :  { %v173_v42 = vsel %vm169_vm0, %v166_v41, %v163_v20  ;;  %v176_v53 = vrot.slane %v161_v44, 1  ;;  %v129_v59 = vadd.f32 %v125_v48, %v117_v54 }
  0xae   :  { %v182_v49 = vsel %vm178_vm1, %v177_v46, %v174_v27  ;;  %v246_v25 = vsel %vm472_vm2, %v173_v42, 0.0  ;;  %v170_v56 = vsel %vm169_vm0, %v165_v52, %v166_v41  ;;  %v171_v57 = vsel %vm169_vm0, %v164_v18, %v165_v52 }
  0xaf   :  { %v272_v32 = vadd.f32 %v306_v19, %v246_v25  ;;  %v179_v22 = vsel %vm178_vm1, %v176_v53, %v177_v46  ;;  %v180_v23 = vsel %vm178_vm1, %v175_v16, %v176_v53  ;;  %v248_v50 = vsel %vm476_vm3, %v171_v57, 0.0 }
  0xb0   :  { %v275_v58 = vadd.f32 %v306_v19, %v170_v56  ;;  %v263_v60 = vsel %vm481_vm4, %v180_v23, 0.0  ;;  %v274_v61 = vadd.f32 %v306_v19, %v248_v50  ;;  %v265_v1 = vsel %vm489_vm5, %v182_v49, 0.0 }
  0xb1   :  { %v276_v62 = vadd.f32 %v272_v32, %v127_v55  ;;  %v281_v0 = vadd.f32 %v277_v47, %v263_v60 }
  0xb2   :  { %v279_v63 = vadd.f32 %v275_v58, %v130_v51  ;;  %v278_v2 = vadd.f32 %v274_v61, %v129_v59 }
  0xb3   :  { %v280_v5 = vadd.f32 %v276_v62, %v181_v37  ;;  %285 = vst [vmem:[#allocation7 + $0x8] sm:$0xff] %v281_v0 }
  0xb4   :  { %v283_v3 = vadd.f32 %v279_v63, %v265_v1  ;;  %v282_v4 = vadd.f32 %v278_v2, %v179_v22 }
  0xb5   :  { %284 = vst [vmem:[#allocation7] sm:$0xff] %v280_v5 }
  0xb6   :  { %287 = vst [vmem:[#allocation7 + $0x18] sm:$0xff] %v283_v3  ;;  %286 = vst [vmem:[#allocation7 + $0x10] sm:$0xff] %v282_v4 }
  0xb7   :  { %370 = shalt.err (!%p367_p6)
}
  0xb8   :  { %s371_s18 = scalar_lea.hbm %s542_s3, 512 }
  0xb9   :  { %p372_p7 = scmp.ne.s32.totalorder %s542_s3, %s371_s18  ;;  %p375_p8 = scmp.lt.u32.totalorder %s371_s18, %s542_s3 }
  0xbb   :  { %p377_p9 = pnand %p375_p8, %p372_p7 }
  0xbd   :  { %380 = shalt.err (!%p377_p9)
}
  0xbe   :  { %299 = dma.vmem_to_hbm [thread:$0]  %s294_s14, 512, %s542_s3, [#allocation4], %s388_s22, %s388_s22, %s389_s23  }
  0xbf   :  { %385 = dma.done.wait [#allocation4], 512  }
  0xc0   :  { %386 = vsyncadd [#allocation4], 4294966784 }
  0xc1   :  { %303 = vsyncpa [#allocation3], 1 }
  0xc2   :  { %304 = vsyncpa [#allocation6], 1 }
  0xc3   :  { %305 = vsyncpa [#allocation4], 1 }

</bundles_post_ra>
